<compile_context>
chip_gen: v5e
topology: v5e:2x2
jax: 0.10.0
libtpu: 0.0.40
codegen_flags: <defaults>
</compile_context>

<pallas_src>
import functools

import numpy as np

import jax
import jax.numpy as jnp
from jax.experimental import pallas as pl
from jax.experimental.pallas import tpu as pltpu

_EPS = 1e-5

# per-image padded grids (26x26, 14x14, 8x8) lane-padded to multiples of 128
_PP1, _PP2, _PP3 = 768, 256, 128


def _round_up(v, m):
    return (v + m - 1) // m * m


# ----------------------- packed bias / scalar operand layout -----------------------

_SEG_SIZES = [("c1w", 144),
              ("c1_b", 16), ("c2_b", 16), ("c3_b", 32), ("c4_b", 32),
              ("c5_b", 64), ("c6_b", 64),
              ("bn1_s", 16), ("bn1_t", 16), ("bn2_s", 32), ("bn2_t", 32),
              ("bn3_s", 64), ("bn3_t", 64),
              ("fc0_b", 144), ("fc1_b", 72), ("fc2_b", 72), ("fc3_b", 72),
              ("fc4_b", 72), ("fc5_b", 72), ("fc6_b", 72), ("fc7_b", 10)]
_SEG_OFF = {}
_o = 0
for _n, _s in _SEG_SIZES:
    _SEG_OFF[_n] = (_o, _s)
    _o += _s
_PACK_LEN = _round_up(_o, 8)


# --------------------------- roll-direction probe ---------------------------

def _detect_roll_sign():
    """Return s such that pltpu.roll(x, s*k, axis) == jnp.roll(x, k, axis)."""
    def probe(x_ref, o_ref):
        o_ref[...] = pltpu.roll(x_ref[...], 1, axis=1)

    x = jnp.tile(jnp.arange(128, dtype=jnp.float32)[None, :], (8, 1))
    y = pl.pallas_call(
        probe,
        out_shape=jax.ShapeDtypeStruct((8, 128), jnp.float32),
        in_specs=[pl.BlockSpec(memory_space=pltpu.MemorySpace.VMEM)],
        out_specs=pl.BlockSpec(memory_space=pltpu.MemorySpace.VMEM),
    )(x)
    mid = float(y[0, 64])          # interior element: immune to wrap-vs-shift semantics
    if mid == 63.0:
        return 1
    if mid == 65.0:
        return -1
    raise RuntimeError(f"unexpected pltpu.roll semantics (y[0,64]={mid})")


# ------------------------------- fused kernel -------------------------------

def _make_kernel(b_tile, roll_sign):
    f32, bf16 = jnp.float32, jnp.bfloat16
    LB1, LB2, LB3 = b_tile * _PP1, b_tile * _PP2, b_tile * _PP3

    def lane_shift(v, off):
        # t[..., p] = v[..., p + off]; wrapped columns only ever land in
        # padded / never-consumed lane positions.
        npix = v.shape[-1]
        s = (-roll_sign * off) % npix
        if s == 0:
            return v
        return pltpu.roll(v, s, axis=1)

    def build_taps(h, wp):
        # h: (Cin, L) f32 -> K-folded im2col (9*Cin, L) bf16,
        # row index = (dy*3 + dx)*Cin + ci  (matches the folded conv weights).
        taps = [lane_shift(h, (dy - 1) * wp + (dx - 1))
                for dy in range(3) for dx in range(3)]
        return jnp.concatenate(taps, axis=0).astype(bf16)

    def pool_window_max(h, wp):
        # 2x2 window max at every padded position; stride-2 subsample follows.
        m = h
        for off in (1, wp, wp + 1):
            m = jnp.maximum(m, lane_shift(h, off))
        return m

    def kernel(x_ref, w2, w3, w4, w5, w6,
               v0, v1, v2, v3, v4, v5, v6, v7,
               t1_ref, t2_ref, e_ref, mask_ref, bias_ref, o_ref):

        def bvec(name):
            o, c = _SEG_OFF[name]
            return bias_ref[o:o + c, :]                 # (c, 1) f32

        def conv(h, wp, w_ref, bname):
            # 3x3 "same" conv + bias + ReLU as a single MXU matmul (K = 9*Cin).
            x9 = build_taps(h, wp)
            acc = jnp.dot(w_ref[...], x9, preferred_element_type=f32)
            return jnp.maximum(acc + bvec(bname), 0.0)

        def subsample(h, pp, t_ref):
            # MaxPool stride-2 subsample + re-zero-padding for the next block,
            # applied with a PER-IMAGE one-hot matrix (O(batch), not O(batch^2)).
            t = t_ref[...]
            hb = h.astype(bf16)
            cols = [jnp.dot(hb[:, i * pp:(i + 1) * pp], t,
                            preferred_element_type=f32) for i in range(b_tile)]
            return jnp.concatenate(cols, axis=1)

        # ---- block 1: Conv(1,16)+ReLU, Conv(16,16)+ReLU, BN, MaxPool, Dropout(id) ----
        x = x_ref[...]                                  # (1, LB1) zero-padded 26x26 grids
        o1, _ = _SEG_OFF["c1w"]
        h = None
        for s in range(9):                              # conv1 on the VPU (Cin = 1)
            dy, dx = s // 3, s % 3
            tap = lane_shift(x, (dy - 1) * 26 + (dx - 1))            # (1, LB1)
            w_col = bias_ref[o1 + 16 * s:o1 + 16 * s + 16, :]        # (16, 1)
            contrib = w_col * tap                                    # (16, LB1)
            h = contrib if h is None else h + contrib
        h = jnp.maximum(h + bvec("c1_b"), 0.0)
        h = h * mask_ref[:, 0:LB1]                      # restore zero-padding ring
        h = conv(h, 26, w2, "c2_b")
        h = h * bvec("bn1_s") + bvec("bn1_t")           # BatchNorm2d (eval) affine
        h = pool_window_max(h, 26)
        h = subsample(h, _PP1, t1_ref)                  # (16, LB2)

        # ---- block 2: Conv(16,32)+ReLU, Conv(32,32)+ReLU, BN, MaxPool, Dropout(id) ----
        h = conv(h, 14, w3, "c3_b")
        h = h * mask_ref[:, LB1:LB1 + LB2]
        h = conv(h, 14, w4, "c4_b")
        h = h * bvec("bn2_s") + bvec("bn2_t")
        h = pool_window_max(h, 14)
        h = subsample(h, _PP2, t2_ref)                  # (32, LB3)

        # ---- block 3: Conv(32,64)+ReLU, Conv(64,64)+ReLU, BN, MaxPool, Dropout(id) ----
        h = conv(h, 8, w5, "c5_b")
        h = h * mask_ref[:, LB1 + LB2:LB1 + LB2 + LB3]
        h = conv(h, 8, w6, "c6_b")
        h = h * bvec("bn3_s") + bvec("bn3_t")
        h = pool_window_max(h, 8)                       # (64, LB3)

        # ---- flatten 3x3x64 -> (576, B): pooled pixels sit at lanes i*128 + pos,
        #      pos in {9,11,13,25,27,29,41,43,45}; bring them all to lane i*128+9
        #      with lane rolls, then one per-tile one-hot selection matmul. ----
        taps = jnp.concatenate(
            [lane_shift(h, s_) for s_ in (0, 2, 4, 16, 18, 20, 32, 34, 36)],
            axis=0).astype(bf16)                        # (576, LB3), row = s*64 + c
        g = jnp.dot(taps, e_ref[...], preferred_element_type=f32)   # (576, B)

        # ---- FC stack: 7x (Linear+ReLU+Dropout(id)), Linear(72,10) + Sigmoid ----
        # TODO(synk): Dropout / Dropout2d layers are eval-mode identities.
        fw = (v0, v1, v2, v3, v4, v5, v6, v7)
        for i in range(8):
            g = jnp.dot(fw[i][...], g.astype(bf16),
                        preferred_element_type=f32) + bvec(f"fc{i}_b")
            if i < 7:
                g = jnp.maximum(g, 0.0)
        o_ref[0, :, :] = 1.0 / (1.0 + jnp.exp(-g))      # Sigmoid, (10, B)

    return kernel


# ------------------------------ wrapper / glue -------------------------------

def cnn_forward(x, kp, *, b_tile, roll_sign):
    n = x.shape[0]
    num_tiles = pl.cdiv(n, b_tile)
    n_pad = num_tiles * b_tile

    # One zero-padded 26x26 plane per image, lane-padded to 768 lanes per image.
    img = x[:, 0].astype(jnp.float32)                         # (n, 24, 24)
    img = jnp.pad(img, ((0, n_pad - n), (1, 1), (1, 1)))      # zero ring
    img = jnp.pad(img.reshape(n_pad, 26 * 26), ((0, 0), (0, _PP1 - 26 * 26)))
    x_lanes = img.reshape(1, n_pad * _PP1)

    consts = ([kp["c2_w"], kp["c3_w"], kp["c4_w"], kp["c5_w"], kp["c6_w"]]
              + [kp[f"fc{i}_w"] for i in range(8)]
              + [kp["T1"], kp["T2"], kp["Esel"], kp["mask_pack"], kp["bias_pack"]])
    # TODO(synk): constants are grid-invariant; single-buffering them via
    # pipeline_mode=pl.Buffered(1) would halve their VMEM but is left default.
    const_specs = [pl.BlockSpec(c.shape, lambda t: (0, 0)) for c in consts]

    out = pl.pallas_call(
        _make_kernel(b_tile, roll_sign),
        out_shape=jax.ShapeDtypeStruct((num_tiles, 10, b_tile), jnp.float32),
        grid=(num_tiles,),
        in_specs=[pl.BlockSpec((1, b_tile * _PP1), lambda t: (0, t))] + const_specs,
        out_specs=pl.BlockSpec((1, 10, b_tile), lambda t: (t, 0, 0)),
        compiler_params=pltpu.CompilerParams(
            dimension_semantics=("parallel",),
            vmem_limit_bytes=48 * 1024 * 1024),
    )(x_lanes, *consts)

    return jnp.transpose(out, (0, 2, 1)).reshape(n_pad, 10)[:n]   # (N, 10)


# ------------------------------- parameters ----------------------------------

def init_params(key):
    """Random parameters in the torch layouts of the reference module."""
    p = {}
    conv_defs = [(1, 16), (16, 16), (16, 32), (32, 32), (32, 64), (64, 64)]
    fc_dims = [(576, 144), (144, 72), (72, 72), (72, 72), (72, 72),
               (72, 72), (72, 72), (72, 10)]
    keys = jax.random.split(key, 2 * (len(conv_defs) + len(fc_dims)))
    ki = iter(keys)
    for i, (cin, cout) in enumerate(conv_defs, start=1):
        w = jax.random.normal(next(ki), (cout, cin, 3, 3), jnp.float32)
        p[f"conv{i}_w"] = w * (1.0 / (3.0 * float(cin) ** 0.5))
        p[f"conv{i}_b"] = jax.random.normal(next(ki), (cout,), jnp.float32) * 0.01
    # TODO(synk): BatchNorm2d is eval mode (running stats); training-mode batch
    # statistics are not implemented.
    for i, c in enumerate([16, 32, 64], start=1):
        p[f"bn{i}_gamma"] = jnp.ones((c,), jnp.float32)
        p[f"bn{i}_beta"] = jnp.zeros((c,), jnp.float32)
        p[f"bn{i}_mean"] = jnp.zeros((c,), jnp.float32)
        p[f"bn{i}_var"] = jnp.ones((c,), jnp.float32)
    for i, (fin, fout) in enumerate(fc_dims):
        w = jax.random.normal(next(ki), (fout, fin), jnp.float32) / (float(fin) ** 0.5)
        p[f"fc{i}_w"] = w
        p[f"fc{i}_b"] = jax.random.normal(next(ki), (fout,), jnp.float32) * 0.01
    return p


def prepare_kernel_params(p, b_tile):
    """Fold torch-layout params into kernel layouts + per-image constants."""
    kp = {}
    # conv2..6 weights: (Cout, Cin, 3, 3) -> (Cout, 9*Cin), col = (ky*3+kx)*Cin + ci
    for i in range(2, 7):
        w = p[f"conv{i}_w"]
        cout, cin = w.shape[0], w.shape[1]
        kp[f"c{i}_w"] = (jnp.transpose(w, (0, 2, 3, 1))
                         .reshape(cout, 9 * cin).astype(jnp.bfloat16))
    # fc0 with the NCHW-flatten permutation folded in (feature row = s*64 + c).
    kp["fc0_w"] = (p["fc0_w"].reshape(144, 64, 9).transpose(0, 2, 1)
                   .reshape(144, 576).astype(jnp.bfloat16))
    for i in range(1, 8):
        kp[f"fc{i}_w"] = p[f"fc{i}_w"].astype(jnp.bfloat16)

    # ---- packed scalar operand: conv1 weight columns, biases, BN affines ----
    vals = {"c1w": np.asarray(p["conv1_w"], np.float32).reshape(16, 9).T.reshape(-1)}
    for i in range(1, 7):
        vals[f"c{i}_b"] = np.asarray(p[f"conv{i}_b"], np.float32)
    for i in range(1, 4):
        g = np.asarray(p[f"bn{i}_gamma"], np.float32)
        v = np.asarray(p[f"bn{i}_var"], np.float32)
        mu = np.asarray(p[f"bn{i}_mean"], np.float32)
        be = np.asarray(p[f"bn{i}_beta"], np.float32)
        s = g / np.sqrt(v + _EPS)
        vals[f"bn{i}_s"] = s
        vals[f"bn{i}_t"] = be - mu * s
    for i in range(8):
        vals[f"fc{i}_b"] = np.asarray(p[f"fc{i}_b"], np.float32)
    pack = np.zeros((_PACK_LEN, 1), np.float32)
    for name, sz in _SEG_SIZES:
        o, _ = _SEG_OFF[name]
        pack[o:o + sz, 0] = vals[name]
    kp["bias_pack"] = jnp.asarray(pack)

    # ---- per-image zero-ring masks (packed along lanes, tiled per batch tile) ----
    def interior(side, pp):
        m = np.zeros((pp,), np.float32)
        for y in range(1, side - 1):
            m[y * side + 1: y * side + side - 1] = 1.0
        return m
    mask = np.concatenate([np.tile(interior(26, _PP1), b_tile),
                           np.tile(interior(14, _PP2), b_tile),
                           np.tile(interior(8, _PP3), b_tile)])
    kp["mask_pack"] = jnp.asarray(mask[None, :])

    # ---- PER-IMAGE pool-subsample matrices + per-tile flatten selection ----
    T1 = np.zeros((_PP1, _PP2), np.float32)
    for py in range(12):
        for px in range(12):
            T1[(2 * py + 1) * 26 + (2 * px + 1), (py + 1) * 14 + (px + 1)] = 1.0
    T2 = np.zeros((_PP2, _PP3), np.float32)
    for py in range(6):
        for px in range(6):
            T2[(2 * py + 1) * 14 + (2 * px + 1), (py + 1) * 8 + (px + 1)] = 1.0
    E = np.zeros((b_tile * _PP3, b_tile), np.float32)
    E[np.arange(b_tile) * _PP3 + 9, np.arange(b_tile)] = 1.0
    kp["T1"] = jnp.asarray(T1, jnp.bfloat16)
    kp["T2"] = jnp.asarray(T2, jnp.bfloat16)
    kp["Esel"] = jnp.asarray(E, jnp.bfloat16)
    return kp


# --------------------------- pure-JAX reference ------------------------------

def reference_forward(x, p):
    h = x.astype(jnp.float32)

    def conv(h, w, b):
        out = jax.lax.conv_general_dilated(
            h, w, (1, 1), ((1, 1), (1, 1)),
            dimension_numbers=("NCHW", "OIHW", "NCHW"))
        return out + b.reshape(1, -1, 1, 1)

    def bn(h, i):
        s = p[f"bn{i}_gamma"] / jnp.sqrt(p[f"bn{i}_var"] + _EPS)
        t = p[f"bn{i}_beta"] - p[f"bn{i}_mean"] * s
        return h * s.reshape(1, -1, 1, 1) + t.reshape(1, -1, 1, 1)

    def pool(h):
        return jax.lax.reduce_window(h, -jnp.inf, jax.lax.max,
                                     (1, 1, 2, 2), (1, 1, 2, 2), "VALID")

    for blk in range(3):
        h = jax.nn.relu(conv(h, p[f"conv{2 * blk + 1}_w"], p[f"conv{2 * blk + 1}_b"]))
        h = jax.nn.relu(conv(h, p[f"conv{2 * blk + 2}_w"], p[f"conv{2 * blk + 2}_b"]))
        h = pool(bn(h, blk + 1))
    h = h.reshape(h.shape[0], -1)
    for i in range(8):
        h = h @ p[f"fc{i}_w"].T + p[f"fc{i}_b"]
        h = jax.nn.relu(h) if i < 7 else jax.nn.sigmoid(h)
    return h


# ----------------------------------- main -------------------------------------

if __name__ == "__main__":
    key = jax.random.PRNGKey(0)
    pkey, xkey = jax.random.split(key)
    params = init_params(pkey)

    # 576 = 64*3*3 after three 2x2 pools -> input spatial must be 24x24 (NCHW).
    # N=6 with B_TILE=4 exercises the batch grid (2 steps) and batch padding.
    N, B_TILE = 6, 4
    x = jax.random.normal(xkey, (N, 1, 24, 24), jnp.float32)

    roll_sign = _detect_roll_sign()
    kparams = prepare_kernel_params(params, B_TILE)

    fwd = jax.jit(functools.partial(cnn_forward, b_tile=B_TILE, roll_sign=roll_sign))
    out = jax.block_until_ready(fwd(x, kparams))

    ref = reference_forward(x, params)
    err = float(jnp.max(jnp.abs(out - ref)))

    assert out.shape == (N, 10), out.shape
    assert bool(jnp.all(jnp.isfinite(out)))
    assert err < 5e-2, f"kernel/reference mismatch: max abs err = {err}"
    print("KERNEL_OK")
</pallas_src>

<mosaic_0001>
module attributes {stable_mosaic.version = 11 : i64} {
  func.func @probe(%arg0: memref<8x128xf32, #tpu.memory_space<vmem>>, %arg1: memref<8x128xf32, #tpu.memory_space<vmem>>) attributes {dimension_semantics = [], scalar_prefetch = 0 : i64, scratch_operands = 0 : i64, tpu.core_type = #tpu.core_type<tc>} {
    %c0 = arith.constant 0 : index
    %c0_0 = arith.constant 0 : index
    %0 = vector.load %arg0[%c0, %c0_0] : memref<8x128xf32, #tpu.memory_space<vmem>>, vector<8x128xf32>
    %c1_i32 = arith.constant 1 : i32
    %1 = tpu.dynamic_rotate %0 by %c1_i32 dim 1 : vector<8x128xf32>, i32 -> vector<8x128xf32>
    %c0_1 = arith.constant 0 : index
    %c0_2 = arith.constant 0 : index
    %2 = vector.load %arg1[%c0_1, %c0_2] : memref<8x128xf32, #tpu.memory_space<vmem>>, vector<8x128xf32>
    tpu.vector_store %arg1[%c0_1, %c0_2], %1 {strides = array<i32>} : memref<8x128xf32, #tpu.memory_space<vmem>>, vector<8x128xf32>,
    return
  }
}

</mosaic_0001>

<bundles_post_ra>
// kernel: tpu_custom_call.1
= control target key start
LH: loop header
LB: loop body
LE: loop exit
PB: predicated region body
PF: predicated region fallthrough
CT: control target
= control target key end

     0   :  { %6 = vsyncpa [#allocation3], 0  ;;  %s118_s0 = inlined_call_operand.hbm [shape: f32[8,128], index: 0, kind: input, shape index: {}]   ;;  %s119_s1 = inlined_call_operand.hbm [shape: f32[8,128], index: 1, kind: output, shape index: {}]  }
   0x1   :  { %7 = vsyncpa [#allocation4], 0  ;;  %s13_s8 = sshll.u32 %s118_s0, 4  ;;  %s99_s9 = smov [#allocation2]   ;;  %s14_s8 = int_to_ptr.hbm [resolvable:$true] %s13_s8 }
   0x2   :  { %s15_s10 = sshll.u32 %s99_s9, 4  ;;  %s16_s10 = int_to_ptr.vmem [resolvable:$true] %s15_s10 }
   0x3   :  { %18 = dma.hbm_to_vmem [thread:$0]  %s14_s8, 128, %s16_s10, [#allocation3]  }
   0x4   :  { %95 = dma.done.wait [#allocation3], 128  }
   0x5   :  { %96 = vsyncadd [#allocation3], 4294967168  ;;  %v23_v0 = vld [vmem:[#allocation2] sm:$0xff]  ;;  %s100_s11 = smov 1   ;;  %s101_s12 = smov [#allocation5]  }
   0x6   :  { %24 = vrot.lane.b32.xlu0 %v23_v0, %s100_s11  ;;  %s32_s13 = sshll.u32 %s101_s12, 4  ;;  %s34_s16 = sshll.u32 %s119_s1, 4  ;;  %s33_s13 = int_to_ptr.vmem [resolvable:$true] %s32_s13  ;;  %s35_s16 = int_to_ptr.hbm [resolvable:$true] %s34_s16 }
  0x78   :  { %v25_v1 = vpop.permute.xlu0 %24 }
  0x79   :  { %26 = vst [vmem:[#allocation5] sm:$0xff] %v25_v1 }
  0x7a   :  { %37 = dma.vmem_to_hbm [thread:$0]  %s33_s13, 128, %s35_s16, [#allocation4]  }
  0x7b   :  { %97 = dma.done.wait [#allocation4], 128  }
  0x7c   :  { %98 = vsyncadd [#allocation4], 4294967168 }
  0x7d   :  { %42 = vsyncpa [#allocation3], 1 }
  0x7e   :  { %43 = vsyncpa [#allocation4], 1 }

</bundles_post_ra>
